<compile_context>
chip_gen: v5e
topology: v5e:2x2
jax: 0.10.0
libtpu: 0.0.40
codegen_flags: <defaults>
</compile_context>

<pallas_src>
import functools

import jax
import jax.numpy as jnp
from jax.experimental import pallas as pl
from jax.experimental.pallas import tpu as pltpu

_LANE = 128
_BF16_SUBLANE = 16
_MAX_TB = 1024


def _round_up(x, m):
    return ((x + m - 1) // m) * m


def _cdiv(a, b):
    return (a + b - 1) // b


# --------------------------------------------------------------------------- #
# Kernels
# --------------------------------------------------------------------------- #
def _mlp_logits(s_ref, w1_ref, b1_ref, w2_ref, b2_ref, w3_ref, b3_ref,
                w4_ref, b4_ref):
    """Shared MLP body: bf16 MXU inputs, f32 accumulation, f32 bias/ReLU."""
    x = s_ref[...].astype(jnp.bfloat16)                       # cast in-kernel

    h = jnp.dot(x, w1_ref[...], preferred_element_type=jnp.float32) + b1_ref[...]
    h = jnp.maximum(h, 0.0).astype(jnp.bfloat16)

    h = jnp.dot(h, w2_ref[...], preferred_element_type=jnp.float32) + b2_ref[...]
    h = jnp.maximum(h, 0.0).astype(jnp.bfloat16)

    h = jnp.dot(h, w3_ref[...], preferred_element_type=jnp.float32) + b3_ref[...]
    h = jnp.maximum(h, 0.0).astype(jnp.bfloat16)

    return jnp.dot(h, w4_ref[...], preferred_element_type=jnp.float32) + b4_ref[...]


def _logits_kernel(s_ref, w1, b1, w2, b2, w3, b3, w4, b4, out_ref):
    out_ref[...] = _mlp_logits(s_ref, w1, b1, w2, b2, w3, b3, w4, b4
                               ).astype(out_ref.dtype)


def _action_kernel(s_ref, w1, b1, w2, b2, w3, b3, w4, b4,
                   logit_ref, prob_ref, *, action_dim):
    """Fused logits + pad-lane masking + softmax (get_action path)."""
    logits = _mlp_logits(s_ref, w1, b1, w2, b2, w3, b3, w4, b4)
    lane = jax.lax.broadcasted_iota(jnp.int32, logits.shape, 1)
    masked = jnp.where(lane < action_dim, logits, -jnp.inf)   # pad lanes -> -inf
    m = jnp.max(masked, axis=-1, keepdims=True)
    e = jnp.exp(masked - m)                                   # exp(-inf) == 0
    p = e / jnp.sum(e, axis=-1, keepdims=True)                # exact division
    logit_ref[...] = masked.astype(logit_ref.dtype)
    prob_ref[...] = p.astype(prob_ref.dtype)


# --------------------------------------------------------------------------- #
# Module wrapper
# --------------------------------------------------------------------------- #
class ActorDiscretePPOPallas:
    """Pallas-TPU implementation of ElegantRL ActorDiscretePPO (forward path)."""

    def __init__(self, mid_dim, state_dim, action_dim, key):
        self.mid_dim = mid_dim
        self.state_dim = state_dim
        self.action_dim = action_dim

        self.m_pad = _round_up(mid_dim, _LANE)
        self.a_pad = _round_up(action_dim, _LANE)

        ks = jax.random.split(key, 8)

        def linear(kw, kb, fan_in, fan_out):
            # torch.nn.Linear default init: U(-1/sqrt(fan_in), +1/sqrt(fan_in))
            bound = 1.0 / float(fan_in) ** 0.5
            w = jax.random.uniform(kw, (fan_in, fan_out), jnp.float32, -bound, bound)
            b = jax.random.uniform(kb, (1, fan_out), jnp.float32, -bound, bound)
            return w, b

        # Logical (unpadded) f32 parameters; weights stored as (in, out) so the
        # kernel computes y = x @ W + b  (== torch's x @ W_t.T + b).
        self.w1, self.b1 = linear(ks[0], ks[1], state_dim, mid_dim)
        self.w2, self.b2 = linear(ks[2], ks[3], mid_dim, mid_dim)
        self.w3, self.b3 = linear(ks[4], ks[5], mid_dim, mid_dim)
        self.w4, self.b4 = linear(ks[6], ks[7], mid_dim, action_dim)

        def pad_w(w, rows, cols):
            return jnp.pad(w, ((0, rows - w.shape[0]), (0, cols - w.shape[1])))

        def pad_b(b, cols):
            return jnp.pad(b, ((0, 0), (0, cols - b.shape[1])))

        # Padded kernel-side parameters (built once at init):
        #   * w1 keeps its logical K = state_dim (no input-feature padding),
        #     only its N is padded to a lane multiple.
        #   * bf16 weights (MXU inputs), f32 biases.
        self.w1p = pad_w(self.w1, state_dim, self.m_pad).astype(jnp.bfloat16)
        self.w2p = pad_w(self.w2, self.m_pad, self.m_pad).astype(jnp.bfloat16)
        self.w3p = pad_w(self.w3, self.m_pad, self.m_pad).astype(jnp.bfloat16)
        self.w4p = pad_w(self.w4, self.m_pad, self.a_pad).astype(jnp.bfloat16)
        self.b1p = pad_b(self.b1, self.m_pad)
        self.b2p = pad_b(self.b2, self.m_pad)
        self.b3p = pad_b(self.b3, self.m_pad)
        self.b4p = pad_b(self.b4, self.a_pad)

        self._action_kernel = functools.partial(_action_kernel,
                                                action_dim=action_dim)

    # ------------------------------------------------------------------ #
    def _tiles(self, batch):
        """Batch tiling: big tiles, minimal tail padding, even grid on megacore."""
        grid = max(1, _cdiv(batch, _MAX_TB))
        if grid > 1 and grid % 2 == 1:
            grid += 1                      # balance work across v7x's 2 TCs
        tb = _round_up(_cdiv(batch, grid), _BF16_SUBLANE)
        return grid, tb, grid * tb

    def _weight_specs(self):
        const = lambda i: (0, 0)           # VMEM-resident across grid steps
        # NOTE(perf): at mid_dim >= 1024 these resident blocks can additionally
        # be marked pipeline_mode=pl.Buffered(1) to avoid pointless
        # double-buffering of never-changing weights (v7x VMEM hygiene).
        return [
            pl.BlockSpec((self.state_dim, self.m_pad), const),   # w1
            pl.BlockSpec((1, self.m_pad), const),                # b1
            pl.BlockSpec((self.m_pad, self.m_pad), const),       # w2
            pl.BlockSpec((1, self.m_pad), const),                # b2
            pl.BlockSpec((self.m_pad, self.m_pad), const),       # w3
            pl.BlockSpec((1, self.m_pad), const),                # b3
            pl.BlockSpec((self.m_pad, self.a_pad), const),       # w4
            pl.BlockSpec((1, self.a_pad), const),                # b4
        ]

    def _vmem_limit(self, tb, n_out):
        wbytes = sum(int(w.size) * 2 for w in (self.w1p, self.w2p, self.w3p, self.w4p))
        bbytes = sum(int(b.size) * 4 for b in (self.b1p, self.b2p, self.b3p, self.b4p))
        iobytes = tb * self.state_dim * 4 + n_out * tb * self.a_pad * 4
        est = 2 * (wbytes + bbytes + iobytes) + (8 << 20)   # dbl-buffer + slack
        return int(max(est, 32 << 20))

    def _run(self, state, kernel, out_dtypes):
        """Run `kernel` over a 1-D batch grid; returns padded outputs + batch."""
        batch = state.shape[0]
        grid, tb, b_pad = self._tiles(batch)

        x = state
        if b_pad != batch:                  # only pad rows when necessary
            x = jnp.pad(x, ((0, b_pad - batch), (0, 0)))

        out_block = pl.BlockSpec((tb, self.a_pad), lambda i: (i, 0))
        grid_spec = pltpu.PrefetchScalarGridSpec(
            num_scalar_prefetch=0,
            grid=(grid,),
            in_specs=[pl.BlockSpec((tb, self.state_dim), lambda i: (i, 0))]
                     + self._weight_specs(),
            out_specs=[out_block] * len(out_dtypes),
        )

        outs = pl.pallas_call(
            kernel,
            out_shape=[jax.ShapeDtypeStruct((b_pad, self.a_pad), dt)
                       for dt in out_dtypes],
            grid_spec=grid_spec,
            compiler_params=pltpu.CompilerParams(
                dimension_semantics=("parallel",),
                vmem_limit_bytes=self._vmem_limit(tb, len(out_dtypes)),
            ),
        )(
            x,
            self.w1p, self.b1p,
            self.w2p, self.b2p,
            self.w3p, self.b3p,
            self.w4p, self.b4p,
        )
        return outs, batch

    # ------------------------------------------------------------------ #
    def forward(self, state):
        """Returns action logits, matching torch's self.net(state)."""
        outs, batch = self._run(state, _logits_kernel, [jnp.float32])
        return outs[0][:batch, :self.action_dim]

    def get_action(self, state, key):
        """Fused logits + masked softmax in-kernel; categorical sample in JAX."""
        outs, batch = self._run(state, self._action_kernel,
                                [jnp.float32, jnp.float32])
        masked_logits, probs = outs
        # Pad lanes are -inf -> probability 0; no pre-sample slice needed.
        # TODO(synk): torch.multinomial / Categorical sampling has no Pallas
        # equivalent; sampled with jax.random.categorical outside the kernel.
        action = jax.random.categorical(key, masked_logits[:batch], axis=-1)
        a_prob = probs[:batch, :self.action_dim]
        return action, a_prob


# --------------------------------------------------------------------------- #
# Reference & self-test
# --------------------------------------------------------------------------- #
def _reference_forward(net, state):
    """Plain-JAX reference mirroring the kernel's numerics (bf16 MXU inputs,
    f32 accumulation, f32 bias/ReLU)."""
    def lin(x, w, b):
        return jnp.dot(x.astype(jnp.bfloat16), w.astype(jnp.bfloat16),
                       preferred_element_type=jnp.float32) + b
    h = jnp.maximum(lin(state, net.w1, net.b1), 0.0)
    h = jnp.maximum(lin(h, net.w2, net.b2), 0.0)
    h = jnp.maximum(lin(h, net.w3, net.b3), 0.0)
    return lin(h, net.w4, net.b4)


if __name__ == "__main__":
    key = jax.random.PRNGKey(0)
    k_param, k_state, k_sample = jax.random.split(key, 3)

    batch = 64
    state_dim = 16
    mid_dim = 32
    action_dim = 4

    net = ActorDiscretePPOPallas(mid_dim, state_dim, action_dim, k_param)
    state = jax.random.normal(k_state, (batch, state_dim), dtype=jnp.float32)

    logits = net.forward(state)
    logits = jax.block_until_ready(logits)
    assert logits.shape == (batch, action_dim)

    action, a_prob = net.get_action(state, k_sample)
    jax.block_until_ready((action, a_prob))
    assert action.shape == (batch,)
    assert a_prob.shape == (batch, action_dim)
    assert bool(jnp.all(action >= 0)) and bool(jnp.all(action < action_dim))

    ref = _reference_forward(net, state)
    assert jnp.allclose(logits, ref, atol=1e-2, rtol=1e-2), (
        float(jnp.max(jnp.abs(logits - ref))))

    ref_prob = jax.nn.softmax(ref, axis=-1)
    assert jnp.allclose(jnp.sum(a_prob, axis=-1), 1.0, atol=1e-4)
    assert jnp.allclose(a_prob, ref_prob, atol=2e-2), (
        float(jnp.max(jnp.abs(a_prob - ref_prob))))

    print("KERNEL_OK")
</pallas_src>

<mosaic_0001>
module attributes {stable_mosaic.version = 11 : i64} {
  func.func @_logits_kernel(%arg0: i32, %arg1: memref<64x16xf32, #tpu.memory_space<vmem>>, %arg2: memref<16x128xbf16, #tpu.memory_space<vmem>>, %arg3: memref<1x128xf32, #tpu.memory_space<vmem>>, %arg4: memref<128x128xbf16, #tpu.memory_space<vmem>>, %arg5: memref<1x128xf32, #tpu.memory_space<vmem>>, %arg6: memref<128x128xbf16, #tpu.memory_space<vmem>>, %arg7: memref<1x128xf32, #tpu.memory_space<vmem>>, %arg8: memref<128x128xbf16, #tpu.memory_space<vmem>>, %arg9: memref<1x128xf32, #tpu.memory_space<vmem>>, %arg10: memref<64x128xf32, #tpu.memory_space<vmem>>) attributes {dimension_semantics = [#tpu.dimension_semantics<parallel>], iteration_bounds = array<i64: 1>, scalar_prefetch = 0 : i64, scratch_operands = 0 : i64, tpu.core_type = #tpu.core_type<tc>, window_params = [{transform_indices = @transform_0, window_bounds = array<i64: 64, 16>}, {pipeline_mode = #tpu.pipeline_mode<synchronous>, transform_indices = @transform_1, window_bounds = array<i64: 16, 128>}, {pipeline_mode = #tpu.pipeline_mode<synchronous>, transform_indices = @transform_2, window_bounds = array<i64: 1, 128>}, {pipeline_mode = #tpu.pipeline_mode<synchronous>, transform_indices = @transform_3, window_bounds = array<i64: 128, 128>}, {pipeline_mode = #tpu.pipeline_mode<synchronous>, transform_indices = @transform_4, window_bounds = array<i64: 1, 128>}, {pipeline_mode = #tpu.pipeline_mode<synchronous>, transform_indices = @transform_5, window_bounds = array<i64: 128, 128>}, {pipeline_mode = #tpu.pipeline_mode<synchronous>, transform_indices = @transform_6, window_bounds = array<i64: 1, 128>}, {pipeline_mode = #tpu.pipeline_mode<synchronous>, transform_indices = @transform_7, window_bounds = array<i64: 128, 128>}, {pipeline_mode = #tpu.pipeline_mode<synchronous>, transform_indices = @transform_8, window_bounds = array<i64: 1, 128>}, {transform_indices = @transform_9, window_bounds = array<i64: 64, 128>}]} {
    %c0 = arith.constant 0 : index
    %c0_0 = arith.constant 0 : index
    %0 = vector.load %arg1[%c0, %c0_0] : memref<64x16xf32, #tpu.memory_space<vmem>>, vector<64x16xf32>
    %1 = arith.truncf %0 : vector<64x16xf32> to vector<64x16xbf16>
    %c0_1 = arith.constant 0 : index
    %c0_2 = arith.constant 0 : index
    %2 = vector.load %arg2[%c0_1, %c0_2] : memref<16x128xbf16, #tpu.memory_space<vmem>>, vector<16x128xbf16>
    %cst = arith.constant dense<0.000000e+00> : vector<64x128xf32>
    %3 = tpu.matmul %1, %2, %cst {dimension_numbers = #tpu.dot_dimension_numbers<[1], [0], [0], [1], [0, 0, 1, 1], [], []>} : vector<64x16xbf16>, vector<16x128xbf16>, vector<64x128xf32> -> vector<64x128xf32>
    %c0_3 = arith.constant 0 : index
    %c0_4 = arith.constant 0 : index
    %4 = vector.load %arg3[%c0_3, %c0_4] : memref<1x128xf32, #tpu.memory_space<vmem>>, vector<1x128xf32>
    %5 = vector.broadcast %4 : vector<1x128xf32> to vector<64x128xf32>
    %6 = arith.addf %3, %5 : vector<64x128xf32>
    %cst_5 = arith.constant 0.000000e+00 : f32
    %7 = vector.broadcast %cst_5 : f32 to vector<64x128xf32>
    %8 = arith.maximumf %6, %7 : vector<64x128xf32>
    %9 = arith.truncf %8 : vector<64x128xf32> to vector<64x128xbf16>
    %c0_6 = arith.constant 0 : index
    %c0_7 = arith.constant 0 : index
    %10 = vector.load %arg4[%c0_6, %c0_7] : memref<128x128xbf16, #tpu.memory_space<vmem>>, vector<128x128xbf16>
    %cst_8 = arith.constant dense<0.000000e+00> : vector<64x128xf32>
    %11 = tpu.matmul %9, %10, %cst_8 {dimension_numbers = #tpu.dot_dimension_numbers<[1], [0], [0], [1], [0, 0, 1, 1], [], []>} : vector<64x128xbf16>, vector<128x128xbf16>, vector<64x128xf32> -> vector<64x128xf32>
    %c0_9 = arith.constant 0 : index
    %c0_10 = arith.constant 0 : index
    %12 = vector.load %arg5[%c0_9, %c0_10] : memref<1x128xf32, #tpu.memory_space<vmem>>, vector<1x128xf32>
    %13 = vector.broadcast %12 : vector<1x128xf32> to vector<64x128xf32>
    %14 = arith.addf %11, %13 : vector<64x128xf32>
    %cst_11 = arith.constant 0.000000e+00 : f32
    %15 = vector.broadcast %cst_11 : f32 to vector<64x128xf32>
    %16 = arith.maximumf %14, %15 : vector<64x128xf32>
    %17 = arith.truncf %16 : vector<64x128xf32> to vector<64x128xbf16>
    %c0_12 = arith.constant 0 : index
    %c0_13 = arith.constant 0 : index
    %18 = vector.load %arg6[%c0_12, %c0_13] : memref<128x128xbf16, #tpu.memory_space<vmem>>, vector<128x128xbf16>
    %cst_14 = arith.constant dense<0.000000e+00> : vector<64x128xf32>
    %19 = tpu.matmul %17, %18, %cst_14 {dimension_numbers = #tpu.dot_dimension_numbers<[1], [0], [0], [1], [0, 0, 1, 1], [], []>} : vector<64x128xbf16>, vector<128x128xbf16>, vector<64x128xf32> -> vector<64x128xf32>
    %c0_15 = arith.constant 0 : index
    %c0_16 = arith.constant 0 : index
    %20 = vector.load %arg7[%c0_15, %c0_16] : memref<1x128xf32, #tpu.memory_space<vmem>>, vector<1x128xf32>
    %21 = vector.broadcast %20 : vector<1x128xf32> to vector<64x128xf32>
    %22 = arith.addf %19, %21 : vector<64x128xf32>
    %cst_17 = arith.constant 0.000000e+00 : f32
    %23 = vector.broadcast %cst_17 : f32 to vector<64x128xf32>
    %24 = arith.maximumf %22, %23 : vector<64x128xf32>
    %25 = arith.truncf %24 : vector<64x128xf32> to vector<64x128xbf16>
    %c0_18 = arith.constant 0 : index
    %c0_19 = arith.constant 0 : index
    %26 = vector.load %arg8[%c0_18, %c0_19] : memref<128x128xbf16, #tpu.memory_space<vmem>>, vector<128x128xbf16>
    %cst_20 = arith.constant dense<0.000000e+00> : vector<64x128xf32>
    %27 = tpu.matmul %25, %26, %cst_20 {dimension_numbers = #tpu.dot_dimension_numbers<[1], [0], [0], [1], [0, 0, 1, 1], [], []>} : vector<64x128xbf16>, vector<128x128xbf16>, vector<64x128xf32> -> vector<64x128xf32>
    %c0_21 = arith.constant 0 : index
    %c0_22 = arith.constant 0 : index
    %28 = vector.load %arg9[%c0_21, %c0_22] : memref<1x128xf32, #tpu.memory_space<vmem>>, vector<1x128xf32>
    %29 = vector.broadcast %28 : vector<1x128xf32> to vector<64x128xf32>
    %30 = arith.addf %27, %29 : vector<64x128xf32>
    %c0_23 = arith.constant 0 : index
    %c0_24 = arith.constant 0 : index
    %31 = vector.load %arg10[%c0_23, %c0_24] : memref<64x128xf32, #tpu.memory_space<vmem>>, vector<64x128xf32>
    tpu.vector_store %arg10[%c0_23, %c0_24], %30 {strides = array<i32>} : memref<64x128xf32, #tpu.memory_space<vmem>>, vector<64x128xf32>,
    return
  }
  func.func @transform_0(%arg0: i32) -> (i32, i32) {
    %c0_i32 = arith.constant 0 : i32
    %c0_i32_0 = arith.constant 0 : i32
    return %arg0, %c0_i32 : i32, i32
  }
  func.func @transform_1(%arg0: i32) -> (i32, i32) {
    %c0_i32 = arith.constant 0 : i32
    %c0_i32_0 = arith.constant 0 : i32
    %c0_i32_1 = arith.constant 0 : i32
    return %c0_i32, %c0_i32_0 : i32, i32
  }
  func.func @transform_2(%arg0: i32) -> (i32, i32) {
    %c0_i32 = arith.constant 0 : i32
    %c0_i32_0 = arith.constant 0 : i32
    %c0_i32_1 = arith.constant 0 : i32
    return %c0_i32, %c0_i32_0 : i32, i32
  }
  func.func @transform_3(%arg0: i32) -> (i32, i32) {
    %c0_i32 = arith.constant 0 : i32
    %c0_i32_0 = arith.constant 0 : i32
    %c0_i32_1 = arith.constant 0 : i32
    return %c0_i32, %c0_i32_0 : i32, i32
  }
  func.func @transform_4(%arg0: i32) -> (i32, i32) {
    %c0_i32 = arith.constant 0 : i32
    %c0_i32_0 = arith.constant 0 : i32
    %c0_i32_1 = arith.constant 0 : i32
    return %c0_i32, %c0_i32_0 : i32, i32
  }
  func.func @transform_5(%arg0: i32) -> (i32, i32) {
    %c0_i32 = arith.constant 0 : i32
    %c0_i32_0 = arith.constant 0 : i32
    %c0_i32_1 = arith.constant 0 : i32
    return %c0_i32, %c0_i32_0 : i32, i32
  }
  func.func @transform_6(%arg0: i32) -> (i32, i32) {
    %c0_i32 = arith.constant 0 : i32
    %c0_i32_0 = arith.constant 0 : i32
    %c0_i32_1 = arith.constant 0 : i32
    return %c0_i32, %c0_i32_0 : i32, i32
  }
  func.func @transform_7(%arg0: i32) -> (i32, i32) {
    %c0_i32 = arith.constant 0 : i32
    %c0_i32_0 = arith.constant 0 : i32
    %c0_i32_1 = arith.constant 0 : i32
    return %c0_i32, %c0_i32_0 : i32, i32
  }
  func.func @transform_8(%arg0: i32) -> (i32, i32) {
    %c0_i32 = arith.constant 0 : i32
    %c0_i32_0 = arith.constant 0 : i32
    %c0_i32_1 = arith.constant 0 : i32
    return %c0_i32, %c0_i32_0 : i32, i32
  }
  func.func @transform_9(%arg0: i32) -> (i32, i32) {
    %c0_i32 = arith.constant 0 : i32
    %c0_i32_0 = arith.constant 0 : i32
    return %arg0, %c0_i32 : i32, i32
  }
}

</mosaic_0001>

<bundles_post_ra>
// kernel: tpu_custom_call.1
= control target key start
LH: loop header
LB: loop body
LE: loop exit
PB: predicated region body
PF: predicated region fallthrough
CT: control target
= control target key end

     0   :  { %14 = vsyncpa [#allocation3], 0  ;;  %s838_s0 = inlined_call_operand.vmem [shape: f32[64,16], index: 0, kind: input, shape index: {}]   ;;  %s839_s1 = inlined_call_operand.vmem [shape: bf16[16,128], index: 1, kind: input, shape index: {}]   ;;  %s840_s2 = inlined_call_operand.vmem [shape: f32[1,128], index: 2, kind: input, shape index: {}]   ;;  %s841_s3 = inlined_call_operand.vmem [shape: bf16[128,128], index: 3, kind: input, shape index: {}]   ;;  %s842_s4 = inlined_call_operand.vmem [shape: f32[1,128], index: 4, kind: input, shape index: {}]   ;;  %s843_s5 = inlined_call_operand.hbm [shape: bf16[128,128], index: 5, kind: input, shape index: {}]   ;;  %s844_s6 = inlined_call_operand.vmem [shape: f32[1,128], index: 6, kind: input, shape index: {}]   ;;  %s845_s7 = inlined_call_operand.hbm [shape: bf16[128,128], index: 7, kind: input, shape index: {}]   ;;  %s846_s8 = inlined_call_operand.vmem [shape: f32[1,128], index: 8, kind: input, shape index: {}]   ;;  %s847_s9 = inlined_call_operand.hbm [shape: f32[64,128], index: 9, kind: output, shape index: {}]  }
   0x1   :  { %15 = vsyncpa [#allocation6], 0 }
   0x2   :  { %16 = vsyncpa [#allocation4], 0  ;;  %s31_s11 = sshll.u32 %s843_s5, 4  ;;  %s705_s12 = smov [#allocation2]   ;;  %s32_s11 = int_to_ptr.hbm [resolvable:$true] %s31_s11 }
   0x3   :  { %s33_s13 = sshll.u32 %s705_s12, 4  ;;  %s46_s16 = sshll.u32 %s845_s7, 4  ;;  %s34_s13 = int_to_ptr.vmem [resolvable:$true] %s33_s13  ;;  %s47_s16 = int_to_ptr.hbm [resolvable:$true] %s46_s16 }
   0x4   :  { %s706_s17 = smov 64   ;;  %s707_s18 = smov 4  }
   0x5   :  { %39 = dma.hbm_to_vmem [thread:$0]  %s32_s11, 1024, %s34_s13, [#allocation3], %s706_s17, %s706_s17, %s707_s18  }
   0x6   :  { %s708_s19 = smov [#allocation5]  }
   0x7   :  { %s48_s20 = sshll.u32 %s708_s19, 4  ;;  %s49_s20 = int_to_ptr.vmem [resolvable:$true] %s48_s20 }
   0x8   :  { %54 = dma.hbm_to_vmem [thread:$0]  %s47_s16, 1024, %s49_s20, [#allocation6], %s706_s17, %s706_s17, %s707_s18  }
   0x9   :  { %699 = dma.done.wait [#allocation3], 1024  }
   0xa   :  { %700 = vsyncadd [#allocation3], 4294966272 }
   0xb   :  { %701 = dma.done.wait [#allocation6], 1024  }
   0xc   :  { %702 = vsyncadd [#allocation6], 4294966272  ;;  %v591_v0 = vld [vmem:[%s839_s1] sm:$0xff]  ;;  %v67_v2 = vld [vmem:[%s838_s0 + $0x8] sm:$0xff]  ;;  %vm90_vm0 = vcmask 130048   ;;  %s473_s13 = sshll.u32 %s847_s9, 4  ;;  %s474_s13 = int_to_ptr.hbm [resolvable:$true] %s473_s13 }
   0xd   :  { %v66_v1 = vld [vmem:[%s838_s0] sm:$0xff]  ;;  %110 = vmatpush.bf16.msra.mxu0 %v591_v0  ;;  %v68_v4 = vld [vmem:[%s838_s0 + $0x10] sm:$0xff]  ;;  %v69_v5 = vld [vmem:[%s838_s0 + $0x18] sm:$0xff]  ;;  %s710_s14 = smov 128   ;;  %s711_s15 = smov 8  }
   0xe   :  { %v74_v3 = vpack.c.bf16 %v67_v2, %v66_v1  ;;  %v75_v6 = vpack.c.bf16 %v69_v5, %v68_v4  ;;  %v599_v7 = vld [vmem:[%s841_s3 + $0x38] sm:$0xff]  ;;  %v598_v8 = vld [vmem:[%s841_s3 + $0x30] sm:$0xff]  ;;  %v597_v9 = vld [vmem:[%s841_s3 + $0x28] sm:$0xff] }
   0xf   :  { %212 = vmatpush.bf16.msra.mxu1 %v599_v7  ;;  %v70_v10 = vld [vmem:[%s838_s0 + $0x20] sm:$0xff]  ;;  %v71_v11 = vld [vmem:[%s838_s0 + $0x28] sm:$0xff]  ;;  %v72_v14 = vld [vmem:[%s838_s0 + $0x30] sm:$0xff] }
  0x10   :  { %491 = vmatmul.msk.bf16.vlgmr.msra.gmra.mxu0 %vm90_vm0, %v74_v3  ;;  %v596_v12 = vld [vmem:[%s841_s3 + $0x20] sm:$0xff]  ;;  %v76_v13 = vpack.c.bf16 %v71_v11, %v70_v10  ;;  %v73_v15 = vld [vmem:[%s838_s0 + $0x38] sm:$0xff]  ;;  %v594_v18 = vld [vmem:[%s841_s3 + $0x10] sm:$0xff] }
  0x11   :  { %v77_v16 = vpack.c.bf16 %v73_v15, %v72_v14  ;;  %v595_v17 = vld [vmem:[%s841_s3 + $0x18] sm:$0xff]  ;;  %v593_v19 = vld [vmem:[%s841_s3 + $0x8] sm:$0xff]  ;;  %v592_v20 = vld [vmem:[%s841_s3] sm:$0xff] }
  0x12   :  { %v623_v22 = vld [vmem:[%s840_s2] ss:$0 sm:$0xff]  ;;  %v607_v36 = vld [vmem:[#allocation2 + $0x38] sm:$0xff]  ;;  %v606_v38 = vld [vmem:[#allocation2 + $0x30] sm:$0xff] }
  0x13   :  { %213 = vmatpush.bf16.msra.mxu1 %v598_v8  ;;  %321 = vmatpush.bf16.msra.mxu2 %v607_v36  ;;  %v605_v39 = vld [vmem:[#allocation2 + $0x28] sm:$0xff]  ;;  %v604_v43 = vld [vmem:[#allocation2 + $0x20] sm:$0xff]  ;;  %v603_v54 = vld [vmem:[#allocation2 + $0x18] sm:$0xff] }
  0x14   :  { %v602_v55 = vld [vmem:[#allocation2 + $0x10] sm:$0xff]  ;;  %v601_v56 = vld [vmem:[#allocation2 + $0x8] sm:$0xff]  ;;  %v600_v57 = vld [vmem:[#allocation2] sm:$0xff] }
  0x15   :  { %v624_v59 = vld [vmem:[%s842_s4] ss:$0 sm:$0xff]  ;;  %v614_v11 = vld [vmem:[#allocation5 + $0x30] sm:$0xff] }
  0x17   :  { %214 = vmatpush.bf16.msra.mxu1 %v597_v9  ;;  %322 = vmatpush.bf16.msra.mxu2 %v606_v38  ;;  %v615_v9 = vld [vmem:[#allocation5 + $0x38] sm:$0xff] }
  0x18   :  { %430 = vmatpush.bf16.msra.mxu3 %v615_v9 }
  0x1b   :  { %215 = vmatpush.bf16.msra.mxu1 %v596_v12  ;;  %323 = vmatpush.bf16.msra.mxu2 %v605_v39  ;;  %v613_v12 = vld [vmem:[#allocation5 + $0x28] sm:$0xff] }
  0x1c   :  { %431 = vmatpush.bf16.msra.mxu3 %v614_v11 }
  0x1f   :  { %216 = vmatpush.bf16.msra.mxu1 %v595_v17  ;;  %324 = vmatpush.bf16.msra.mxu2 %v604_v43 }
  0x20   :  { %492 = vmatmul.msk.bf16.gmra.mxu0 %vm90_vm0, %v75_v6  ;;  %432 = vmatpush.bf16.msra.mxu3 %v613_v12 }
  0x23   :  { %217 = vmatpush.bf16.msra.mxu1 %v594_v18  ;;  %325 = vmatpush.bf16.msra.mxu2 %v603_v54 }
  0x27   :  { %218 = vmatpush.bf16.msra.mxu1 %v593_v19  ;;  %326 = vmatpush.bf16.msra.mxu2 %v602_v55 }
  0x2b   :  { %219 = vmatpush.bf16.msra.mxu1 %v592_v20  ;;  %327 = vmatpush.bf16.msra.mxu2 %v601_v56 }
  0x2f   :  { %328 = vmatpush.bf16.msra.mxu2 %v600_v57 }
  0x30   :  { %493 = vmatmul.msk.bf16.gmra.mxu0 %vm90_vm0, %v76_v13 }
  0x40   :  { %494 = vmatmul.msk.bf16.gmra.mxu0 %vm90_vm0, %v77_v16  ;;  %v612_v16 = vld [vmem:[#allocation5 + $0x20] sm:$0xff] }
  0x41   :  { %433 = vmatpush.bf16.msra.mxu3 %v612_v16 }
  0x8d   :  { %v112_v21 = vpop.f32.mrf.mxu0 }
  0x8e   :  { %v113_v23 = vadd.f32 %v623_v22, %v112_v21 }
  0x90   :  { %v132_v26 = vmax.f32 %v113_v23, 0.0 }
  0x95   :  { %v114_v24 = vpop.f32.mrf.mxu0 }
  0x96   :  { %v115_v25 = vadd.f32 %v623_v22, %v114_v24 }
  0x98   :  { %v133_v27 = vmax.f32 %v115_v25, 0.0 }
  0x9a   :  { %v140_v28 = vpack.c.bf16 %v133_v27, %v132_v26  ;;  %v611_v27 = vld [vmem:[#allocation5 + $0x18] sm:$0xff] }
  0x9b   :  { %434 = vmatpush.bf16.msra.mxu3 %v611_v27 }
  0x9c   :  { %220 = vmatmul.bf16.vlgmr.msra.gmra.mxu1 %v140_v28  ;;  %v610_v28 = vld [vmem:[#allocation5 + $0x10] sm:$0xff] }
  0x9d   :  { %v117_v29 = vpop.f32.mrf.mxu0 }
  0x9e   :  { %v118_v30 = vadd.f32 %v623_v22, %v117_v29  ;;  %v609_v29 = vld [vmem:[#allocation5 + $0x8] sm:$0xff] }
  0x9f   :  { %435 = vmatpush.bf16.msra.mxu3 %v610_v28 }
  0xa0   :  { %v134_v33 = vmax.f32 %v118_v30, 0.0  ;;  %v608_v30 = vld [vmem:[#allocation5] sm:$0xff] }
  0xa3   :  { %436 = vmatpush.bf16.msra.mxu3 %v609_v29 }
  0xa5   :  { %v119_v31 = vpop.f32.mrf.mxu0 }
  0xa6   :  { %v120_v32 = vadd.f32 %v623_v22, %v119_v31 }
  0xa7   :  { %437 = vmatpush.bf16.msra.mxu3 %v608_v30 }
  0xa8   :  { %v135_v34 = vmax.f32 %v120_v32, 0.0  ;;  %v625_v32 = vld [vmem:[%s844_s6] ss:$0 sm:$0xff] }
  0xaa   :  { %v141_v35 = vpack.c.bf16 %v135_v34, %v134_v33 }
  0xac   :  { %225 = vmatmul.bf16.gmra.mxu1 %v141_v35 }
  0xad   :  { %v122_v37 = vpop.f32.mrf.mxu0 }
  0xae   :  { %v123_v40 = vadd.f32 %v623_v22, %v122_v37 }
  0xb0   :  { %v136_v44 = vmax.f32 %v123_v40, 0.0 }
  0xb5   :  { %v124_v41 = vpop.f32.mrf.mxu0 }
  0xb6   :  { %v125_v42 = vadd.f32 %v623_v22, %v124_v41 }
  0xb8   :  { %v137_v45 = vmax.f32 %v125_v42, 0.0 }
  0xba   :  { %v142_v46 = vpack.c.bf16 %v137_v45, %v136_v44 }
  0xbc   :  { %230 = vmatmul.bf16.gmra.mxu1 %v142_v46 }
  0xbd   :  { %v127_v47 = vpop.f32.mrf.mxu0 }
  0xbe   :  { %v128_v48 = vadd.f32 %v623_v22, %v127_v47 }
  0xc0   :  { %v138_v51 = vmax.f32 %v128_v48, 0.0 }
  0xc5   :  { %v129_v49 = vpop.f32.mrf.mxu0 }
  0xc6   :  { %v130_v50 = vadd.f32 %v623_v22, %v129_v49 }
  0xc8   :  { %v139_v52 = vmax.f32 %v130_v50, 0.0 }
  0xca   :  { %v143_v53 = vpack.c.bf16 %v139_v52, %v138_v51 }
  0xcc   :  { %235 = vmatmul.bf16.gmra.mxu1 %v143_v53 }
 0x119   :  { %v221_v58 = vpop.f32.mrf.mxu1 }
 0x11a   :  { %v222_v60 = vadd.f32 %v624_v59, %v221_v58 }
 0x11c   :  { %v241_v63 = vmax.f32 %v222_v60, 0.0  ;;  %v626_v60 = vld [vmem:[%s846_s8] ss:$0 sm:$0xff]  ;;  %s709_s8 = smov [#allocation7]  }
 0x11d   :  { %s471_s10 = sshll.u32 %s709_s8, 4  ;;  %s472_s10 = int_to_ptr.vmem [resolvable:$true] %s471_s10 }
 0x121   :  { %v223_v61 = vpop.f32.mrf.mxu1 }
 0x122   :  { %v224_v62 = vadd.f32 %v624_v59, %v223_v61 }
 0x124   :  { %v242_v0 = vmax.f32 %v224_v62, 0.0 }
 0x126   :  { %v249_v1 = vpack.c.bf16 %v242_v0, %v241_v63 }
 0x128   :  { %329 = vmatmul.bf16.vlgmr.msra.gmra.mxu2 %v249_v1 }
 0x129   :  { %v226_v2 = vpop.f32.mrf.mxu1 }
 0x12a   :  { %v227_v3 = vadd.f32 %v624_v59, %v226_v2 }
 0x12c   :  { %v243_v6 = vmax.f32 %v227_v3, 0.0 }
 0x131   :  { %v228_v4 = vpop.f32.mrf.mxu1 }
 0x132   :  { %v229_v5 = vadd.f32 %v624_v59, %v228_v4 }
 0x134   :  { %v244_v7 = vmax.f32 %v229_v5, 0.0 }
 0x136   :  { %v250_v8 = vpack.c.bf16 %v244_v7, %v243_v6 }
 0x138   :  { %334 = vmatmul.bf16.gmra.mxu2 %v250_v8 }
 0x139   :  { %v231_v10 = vpop.f32.mrf.mxu1 }
 0x13a   :  { %v232_v13 = vadd.f32 %v624_v59, %v231_v10 }
 0x13c   :  { %v245_v17 = vmax.f32 %v232_v13, 0.0 }
 0x141   :  { %v233_v14 = vpop.f32.mrf.mxu1 }
 0x142   :  { %v234_v15 = vadd.f32 %v624_v59, %v233_v14 }
 0x144   :  { %v246_v18 = vmax.f32 %v234_v15, 0.0 }
 0x146   :  { %v251_v19 = vpack.c.bf16 %v246_v18, %v245_v17 }
 0x148   :  { %339 = vmatmul.bf16.gmra.mxu2 %v251_v19 }
 0x149   :  { %v236_v20 = vpop.f32.mrf.mxu1 }
 0x14a   :  { %v237_v21 = vadd.f32 %v624_v59, %v236_v20 }
 0x14c   :  { %v247_v24 = vmax.f32 %v237_v21, 0.0 }
 0x151   :  { %v238_v22 = vpop.f32.mrf.mxu1 }
 0x152   :  { %v239_v23 = vadd.f32 %v624_v59, %v238_v22 }
 0x154   :  { %v248_v25 = vmax.f32 %v239_v23, 0.0 }
 0x156   :  { %v252_v26 = vpack.c.bf16 %v248_v25, %v247_v24 }
 0x158   :  { %344 = vmatmul.bf16.gmra.mxu2 %v252_v26 }
 0x1ab   :  { %v330_v31 = vpop.f32.mrf.mxu2 }
 0x1ac   :  { %v331_v33 = vadd.f32 %v625_v32, %v330_v31 }
 0x1ae   :  { %v350_v36 = vmax.f32 %v331_v33, 0.0 }
 0x1b3   :  { %v332_v34 = vpop.f32.mrf.mxu2 }
 0x1b4   :  { %v333_v35 = vadd.f32 %v625_v32, %v332_v34 }
 0x1b6   :  { %v351_v37 = vmax.f32 %v333_v35, 0.0 }
 0x1b8   :  { %v358_v38 = vpack.c.bf16 %v351_v37, %v350_v36 }
 0x1ba   :  { %438 = vmatmul.bf16.vlgmr.msra.gmra.mxu3 %v358_v38 }
 0x1bb   :  { %v335_v39 = vpop.f32.mrf.mxu2 }
 0x1bc   :  { %v336_v40 = vadd.f32 %v625_v32, %v335_v39 }
 0x1be   :  { %v352_v43 = vmax.f32 %v336_v40, 0.0 }
 0x1c3   :  { %v337_v41 = vpop.f32.mrf.mxu2 }
 0x1c4   :  { %v338_v42 = vadd.f32 %v625_v32, %v337_v41 }
 0x1c6   :  { %v353_v44 = vmax.f32 %v338_v42, 0.0 }
 0x1c8   :  { %v359_v45 = vpack.c.bf16 %v353_v44, %v352_v43 }
 0x1ca   :  { %443 = vmatmul.bf16.gmra.mxu3 %v359_v45 }
 0x1cb   :  { %v340_v46 = vpop.f32.mrf.mxu2 }
 0x1cc   :  { %v341_v47 = vadd.f32 %v625_v32, %v340_v46 }
 0x1ce   :  { %v354_v50 = vmax.f32 %v341_v47, 0.0 }
 0x1d3   :  { %v342_v48 = vpop.f32.mrf.mxu2 }
 0x1d4   :  { %v343_v49 = vadd.f32 %v625_v32, %v342_v48 }
 0x1d6   :  { %v355_v51 = vmax.f32 %v343_v49, 0.0 }
 0x1d8   :  { %v360_v52 = vpack.c.bf16 %v355_v51, %v354_v50 }
 0x1da   :  { %448 = vmatmul.bf16.gmra.mxu3 %v360_v52 }
 0x1db   :  { %v345_v53 = vpop.f32.mrf.mxu2 }
 0x1dc   :  { %v346_v54 = vadd.f32 %v625_v32, %v345_v53 }
 0x1de   :  { %v356_v57 = vmax.f32 %v346_v54, 0.0 }
 0x1e3   :  { %v347_v55 = vpop.f32.mrf.mxu2 }
 0x1e4   :  { %v348_v56 = vadd.f32 %v625_v32, %v347_v55 }
 0x1e6   :  { %v357_v58 = vmax.f32 %v348_v56, 0.0 }
 0x1e8   :  { %v361_v59 = vpack.c.bf16 %v357_v58, %v356_v57 }
 0x1ea   :  { %453 = vmatmul.bf16.gmra.mxu3 %v361_v59 }
 0x23d   :  { %v439_v61 = vpop.f32.mrf.mxu3 }
 0x23e   :  { %v440_v62 = vadd.f32 %v626_v60, %v439_v61 }
 0x240   :  { %459 = vst [vmem:[#allocation7] sm:$0xff] %v440_v62 }
 0x245   :  { %v441_v63 = vpop.f32.mrf.mxu3 }
 0x246   :  { %v442_v0 = vadd.f32 %v626_v60, %v441_v63 }
 0x248   :  { %460 = vst [vmem:[#allocation7 + $0x8] sm:$0xff] %v442_v0 }
 0x24d   :  { %v444_v1 = vpop.f32.mrf.mxu3 }
 0x24e   :  { %v445_v2 = vadd.f32 %v626_v60, %v444_v1 }
 0x250   :  { %461 = vst [vmem:[#allocation7 + $0x10] sm:$0xff] %v445_v2 }
 0x255   :  { %v446_v3 = vpop.f32.mrf.mxu3 }
 0x256   :  { %v447_v4 = vadd.f32 %v626_v60, %v446_v3 }
 0x258   :  { %462 = vst [vmem:[#allocation7 + $0x18] sm:$0xff] %v447_v4 }
 0x25d   :  { %v449_v5 = vpop.f32.mrf.mxu3 }
 0x25e   :  { %v450_v6 = vadd.f32 %v626_v60, %v449_v5 }
 0x260   :  { %463 = vst [vmem:[#allocation7 + $0x20] sm:$0xff] %v450_v6 }
 0x265   :  { %v451_v7 = vpop.f32.mrf.mxu3 }
 0x266   :  { %v452_v8 = vadd.f32 %v626_v60, %v451_v7 }
 0x268   :  { %464 = vst [vmem:[#allocation7 + $0x28] sm:$0xff] %v452_v8 }
 0x26d   :  { %v454_v9 = vpop.f32.mrf.mxu3 }
 0x26e   :  { %v455_v10 = vadd.f32 %v626_v60, %v454_v9 }
 0x270   :  { %465 = vst [vmem:[#allocation7 + $0x30] sm:$0xff] %v455_v10 }
 0x275   :  { %v456_v11 = vpop.f32.mrf.mxu3 }
 0x276   :  { %v457_v12 = vadd.f32 %v626_v60, %v456_v11 }
 0x278   :  { %466 = vst [vmem:[#allocation7 + $0x38] sm:$0xff] %v457_v12 }
 0x279   :  { %479 = dma.vmem_to_hbm [thread:$0]  %s472_s10, 1024, %s474_s13, [#allocation4], %s710_s14, %s710_s14, %s711_s15  }
 0x27a   :  { %703 = dma.done.wait [#allocation4], 1024  }
 0x27b   :  { %704 = vsyncadd [#allocation4], 4294966272 }
 0x27c   :  { %484 = vsyncpa [#allocation3], 1 }
 0x27d   :  { %485 = vsyncpa [#allocation6], 1 }
 0x27e   :  { %486 = vsyncpa [#allocation4], 1 }

</bundles_post_ra>
